<compile_context>
chip_gen: v5e
topology: v5e:2x2
jax: 0.10.0
libtpu: 0.0.40
codegen_flags: <defaults>
</compile_context>

<pallas_src>
import functools

import jax
import jax.numpy as jnp
from jax.experimental import pallas as pl
from jax.experimental.pallas import tpu as pltpu


def se_plus_add_kernel(x_ref, w1_ref, w2_ref, o_ref, *, inv_hw):
    # x_ref/o_ref: (bt, C, HW)   w1_ref: (C, Cr)   w2_ref: (Cr, C)   (f32 weights)

    # Squeeze: spatial mean over the lane axis, accumulated in f32.
    # Read directly from the ref; don't keep the whole tile live across the
    # excitation (avoids vreg spills / extra VMEM copies for multi-MiB tiles).
    pool = jnp.sum(x_ref[...], axis=-1, dtype=jnp.float32) * inv_hw    # (bt, C)

    # Excitation: Linear -> LeakyReLU(0.2) -> Linear -> Tanh (tanh on EUP).
    # Tiny matmuls; FLOPs negligible, kept in f32.
    h = jnp.dot(pool, w1_ref[...], preferred_element_type=jnp.float32)  # (bt, Cr)
    h = jnp.where(h >= 0.0, h, 0.2 * h)                                 # LeakyReLU(0.2)
    y = jnp.tanh(jnp.dot(h, w2_ref[...],
                         preferred_element_type=jnp.float32))           # (bt, C)

    # "PlusAdd": broadcast per-channel offset over spatial. Re-read x_ref near
    # its use so the store streams under the DMA pipeline. (y is cast down to
    # x.dtype before the add; identical for f32, within ~1 ulp for bf16.)
    o_ref[...] = (x_ref[...] + y[:, :, None].astype(x_ref.dtype)).astype(o_ref.dtype)


def _select_tiling(B, bytes_per_image, weight_bytes):
    """Generation-aware batch tile, grid size and VMEM limit."""
    try:
        vmem_cap = int(pltpu.get_tpu_info().vmem_capacity_bytes)
    except Exception:
        vmem_cap = 64 * 1024 * 1024          # conservative (v7x per-TC)

    if vmem_cap <= 64 * 1024 * 1024:
        # v7x-class: halved VMEM, 2 TCs -> smaller blocks, >=4 steps so each
        # TensorCore gets >=2 for double-buffering.
        max_block_bytes, target_steps = 7 * 1024 * 1024, 4
    else:
        # v5e / v6e: single TC, 128 MiB VMEM -> go big, just keep >=2 steps
        # for pipeline overlap.
        max_block_bytes, target_steps = 16 * 1024 * 1024, 2

    bt = max(1, min(B, max_block_bytes // max(1, bytes_per_image)))
    if bt > 1:
        # Keep enough grid steps for pipelining / megacore without shrinking
        # below one image per block.
        bt = min(bt, max(1, pl.cdiv(B, target_steps)))
    grid = pl.cdiv(B, bt)

    # VMEM budget: in + out blocks double-buffered, weights double-buffered,
    # plus a small margin for internal scratch.
    required = 4 * bt * bytes_per_image + 4 * weight_bytes + (2 << 20)
    ceiling = max(vmem_cap - (4 << 20), 16 << 20)
    if required > ceiling:
        # TODO(synk): two-pass (pool pass then add pass) over HW chunks with x
        # left in HBM (pl.ANY + manual DMA) for images too large for VMEM.
        raise ValueError(
            f"SELayerPlusAdd kernel: one block needs {required} bytes of VMEM "
            f"but only {ceiling} are usable; image too large for single-pass kernel.")
    vmem_limit = min(max(required, 48 << 20), ceiling)
    return bt, grid, vmem_limit


def se_layer_plus_add(x_nchw, w1, w2):
    """SELayerPlusAdd forward. x: (B,C,H,W); w1: (C, C//r); w2: (C//r, C)."""
    B, C, H, W = x_nchw.shape
    HW = H * W
    # No HW padding: the (C, HW) plane is the full array extent of the last two
    # dims, which is exempt from the (8,128) block-shape rule. Partial final
    # lane-vregs become masked stores, far cheaper than an extra HBM pass.
    x = x_nchw.reshape(B, C, HW)
    w1 = w1.astype(jnp.float32)
    w2 = w2.astype(jnp.float32)
    Cr = w1.shape[1]

    bytes_per_image = C * HW * x.dtype.itemsize
    weight_bytes = (C * Cr + Cr * C) * 4
    bt, grid, vmem_limit = _select_tiling(B, bytes_per_image, weight_bytes)

    kernel = functools.partial(se_plus_add_kernel, inv_hw=1.0 / HW)

    out = pl.pallas_call(
        kernel,
        out_shape=jax.ShapeDtypeStruct((B, C, HW), x_nchw.dtype),
        grid_spec=pltpu.PrefetchScalarGridSpec(
            num_scalar_prefetch=0,
            grid=(grid,),                               # cdiv grid; ragged last block OK
            in_specs=[
                pl.BlockSpec((bt, C, HW), lambda b: (b, 0, 0)),
                pl.BlockSpec((C, Cr), lambda b: (0, 0)),
                pl.BlockSpec((Cr, C), lambda b: (0, 0)),
            ],
            out_specs=pl.BlockSpec((bt, C, HW), lambda b: (b, 0, 0)),
        ),
        compiler_params=pltpu.CompilerParams(
            dimension_semantics=("parallel",),
            vmem_limit_bytes=vmem_limit),
    )(x, w1, w2)

    return out.reshape(B, C, H, W)


def se_layer_plus_add_ref(x, w1, w2):
    """Pure-JAX reference matching the PyTorch forward."""
    pool = jnp.mean(x.astype(jnp.float32), axis=(2, 3))          # (B, C)
    h = pool @ w1.astype(jnp.float32)                            # (B, Cr)
    h = jnp.where(h >= 0.0, h, 0.2 * h)                          # LeakyReLU(0.2)
    y = jnp.tanh(h @ w2.astype(jnp.float32))                     # (B, C)
    return (x.astype(jnp.float32) + y[:, :, None, None]).astype(x.dtype)


if __name__ == "__main__":
    # Shapes chosen to exercise the new paths: B not a "nice" divisor target
    # (ragged cdiv grid) and HW = 196 (not a multiple of 128, no padding).
    B, C, H, W = 5, 32, 14, 14
    reduction = 16
    Cr = C // reduction                                  # hidden = 2

    key = jax.random.PRNGKey(0)
    kx, k1, k2 = jax.random.split(key, 3)

    x = jax.random.normal(kx, (B, C, H, W), dtype=jnp.float32)
    # Deterministic synthetic weights (torch Linear weights, pre-transposed).
    w1 = jax.random.normal(k1, (C, Cr), dtype=jnp.float32) * 0.1
    w2 = jax.random.normal(k2, (Cr, C), dtype=jnp.float32) * 0.1

    out = jax.block_until_ready(se_layer_plus_add(x, w1, w2))
    ref = se_layer_plus_add_ref(x, w1, w2)

    assert out.shape == (B, C, H, W)
    assert jnp.allclose(out, ref, atol=1e-5, rtol=1e-5)
    print("KERNEL_OK")
</pallas_src>

<mosaic_0001>
module attributes {stable_mosaic.version = 11 : i64} {
  func.func @se_plus_add_kernel(%arg0: i32, %arg1: memref<2x32x196xf32, #tpu.memory_space<vmem>>, %arg2: memref<32x2xf32, #tpu.memory_space<vmem>>, %arg3: memref<2x32xf32, #tpu.memory_space<vmem>>, %arg4: memref<2x32x196xf32, #tpu.memory_space<vmem>>) attributes {dimension_semantics = [#tpu.dimension_semantics<parallel>], iteration_bounds = array<i64: 3>, scalar_prefetch = 0 : i64, scratch_operands = 0 : i64, tpu.core_type = #tpu.core_type<tc>, window_params = [{transform_indices = @transform_0, window_bounds = array<i64: 2, 32, 196>}, {pipeline_mode = #tpu.pipeline_mode<synchronous>, transform_indices = @transform_1, window_bounds = array<i64: 32, 2>}, {pipeline_mode = #tpu.pipeline_mode<synchronous>, transform_indices = @transform_2, window_bounds = array<i64: 2, 32>}, {transform_indices = @transform_3, window_bounds = array<i64: 2, 32, 196>}]} {
    %c0 = arith.constant 0 : index
    %c0_0 = arith.constant 0 : index
    %c0_1 = arith.constant 0 : index
    %0 = vector.load %arg1[%c0, %c0_0, %c0_1] : memref<2x32x196xf32, #tpu.memory_space<vmem>>, vector<2x32x196xf32>
    %cst = arith.constant dense<0.000000e+00> : vector<2x32xf32>
    %1 = vector.multi_reduction <add>, %0, %cst [2] : vector<2x32x196xf32> to vector<2x32xf32>
    %cst_2 = arith.constant 0.00510204071 : f32
    %2 = vector.broadcast %cst_2 : f32 to vector<2x32xf32>
    %3 = arith.mulf %1, %2 : vector<2x32xf32>
    %c0_3 = arith.constant 0 : index
    %c0_4 = arith.constant 0 : index
    %4 = vector.load %arg2[%c0_3, %c0_4] : memref<32x2xf32, #tpu.memory_space<vmem>>, vector<32x2xf32>
    %cst_5 = arith.constant dense<0.000000e+00> : vector<2x2xf32>
    %5 = tpu.matmul %3, %4, %cst_5 {dimension_numbers = #tpu.dot_dimension_numbers<[1], [0], [0], [1], [0, 0, 1, 1], [], []>} : vector<2x32xf32>, vector<32x2xf32>, vector<2x2xf32> -> vector<2x2xf32>
    %cst_6 = arith.constant 0.000000e+00 : f32
    %6 = vector.broadcast %cst_6 : f32 to vector<2x2xf32>
    %7 = arith.cmpf oge, %5, %6 : vector<2x2xf32>
    %cst_7 = arith.constant 2.000000e-01 : f32
    %8 = vector.broadcast %cst_7 : f32 to vector<2x2xf32>
    %9 = arith.mulf %8, %5 : vector<2x2xf32>
    %10 = arith.select %7, %5, %9 : vector<2x2xi1>, vector<2x2xf32>
    %c0_8 = arith.constant 0 : index
    %c0_9 = arith.constant 0 : index
    %11 = vector.load %arg3[%c0_8, %c0_9] : memref<2x32xf32, #tpu.memory_space<vmem>>, vector<2x32xf32>
    %cst_10 = arith.constant dense<0.000000e+00> : vector<2x32xf32>
    %12 = tpu.matmul %10, %11, %cst_10 {dimension_numbers = #tpu.dot_dimension_numbers<[1], [0], [0], [1], [0, 0, 1, 1], [], []>} : vector<2x2xf32>, vector<2x32xf32>, vector<2x32xf32> -> vector<2x32xf32>
    %13 = math.tanh %12 : vector<2x32xf32>
    %c0_11 = arith.constant 0 : index
    %c0_12 = arith.constant 0 : index
    %c0_13 = arith.constant 0 : index
    %14 = vector.load %arg1[%c0_11, %c0_12, %c0_13] : memref<2x32x196xf32, #tpu.memory_space<vmem>>, vector<2x32x196xf32>
    %15 = vector.shape_cast %13 : vector<2x32xf32> to vector<2x32x1xf32>
    %16 = vector.broadcast %15 : vector<2x32x1xf32> to vector<2x32x196xf32>
    %17 = arith.addf %14, %16 : vector<2x32x196xf32>
    %c0_14 = arith.constant 0 : index
    %c0_15 = arith.constant 0 : index
    %c0_16 = arith.constant 0 : index
    %18 = vector.load %arg4[%c0_14, %c0_15, %c0_16] : memref<2x32x196xf32, #tpu.memory_space<vmem>>, vector<2x32x196xf32>
    tpu.vector_store %arg4[%c0_14, %c0_15, %c0_16], %17 {strides = array<i32>} : memref<2x32x196xf32, #tpu.memory_space<vmem>>, vector<2x32x196xf32>,
    return
  }
  func.func @transform_0(%arg0: i32) -> (i32, i32, i32) {
    %c0_i32 = arith.constant 0 : i32
    %c0_i32_0 = arith.constant 0 : i32
    %c0_i32_1 = arith.constant 0 : i32
    return %arg0, %c0_i32, %c0_i32_0 : i32, i32, i32
  }
  func.func @transform_1(%arg0: i32) -> (i32, i32) {
    %c0_i32 = arith.constant 0 : i32
    %c0_i32_0 = arith.constant 0 : i32
    %c0_i32_1 = arith.constant 0 : i32
    return %c0_i32, %c0_i32_0 : i32, i32
  }
  func.func @transform_2(%arg0: i32) -> (i32, i32) {
    %c0_i32 = arith.constant 0 : i32
    %c0_i32_0 = arith.constant 0 : i32
    %c0_i32_1 = arith.constant 0 : i32
    return %c0_i32, %c0_i32_0 : i32, i32
  }
  func.func @transform_3(%arg0: i32) -> (i32, i32, i32) {
    %c0_i32 = arith.constant 0 : i32
    %c0_i32_0 = arith.constant 0 : i32
    %c0_i32_1 = arith.constant 0 : i32
    return %arg0, %c0_i32, %c0_i32_0 : i32, i32, i32
  }
}

</mosaic_0001>

<bundles_post_ra>
// kernel: tpu_custom_call.1
= control target key start
LH: loop header
LB: loop body
LE: loop exit
PB: predicated region body
PF: predicated region fallthrough
CT: control target
= control target key end

     0   :  { %8 = vsyncpa [#allocation3], 0  ;;  %s1096_s0 = inlined_call_operand.hbm [shape: f32[5,32,196], index: 0, kind: input, shape index: {}]   ;;  %s1097_s1 = inlined_call_operand.vmem [shape: f32[32,2], index: 1, kind: input, shape index: {}]   ;;  %s1098_s2 = inlined_call_operand.vmem [shape: f32[2,32], index: 2, kind: input, shape index: {}]   ;;  %s1099_s3 = inlined_call_operand.hbm [shape: f32[5,32,196], index: 3, kind: output, shape index: {}]  }
   0x1   :  { %10 = vsyncpa [#allocation3 + $0x1], 0 }
   0x2   :  { %11 = vsyncpa [#allocation4], 0 }
   0x3   :  { %13 = vsyncpa [#allocation4 + $0x1], 0  ;;  %s790_s12 = smov 0   ;;  %s792_s13 = smov 0  }
   0x4   :  { %s794_s14 = smov 0   ;;  %s796_s15 = smov 0  }
   0x5 LB: > { %s811_s16 = sadd.s32 4294967295, %s762_s15   ;;  %s547_s17 = sadd.s32 4294967294, %s762_s15   ;;  %s762_s15 = sphi %s796_s15, %s1108_s15   ;;  %s758_s14 = sphi %s794_s14, %s1107_s14   ;;  %s754_s13 = sphi %s792_s13, %s1106_s13   ;;  %s750_s12 = sphi %s790_s12, %s1105_s12  }
   0x6   : > { %s815_s18 = sadd.s32 1, %s762_s15   ;;  %s26_s19 = sadd.s32 1, %s758_s14 }
   0x7   : > { %s23_s20 = ssub.s32 %s762_s15, %s815_s18  ;;  %p33_p0 = scmp.ne.s32.totalorder %s758_s14, %s754_s13 }
   0x8   : > { %p24_p1 = scmp.eq.s32.totalorder %s23_s20, 0  ;;  %p34_p2 = scmp.eq.s32.totalorder %s762_s15, 0 }
   0x9   : > { %p39_p3 = scmp.ne.s32.totalorder %s754_s13, %s750_s12  ;;  %p40_p4 = scmp.eq.s32.totalorder %s811_s16, 0 }
   0xa   : > { %s827_s21 = scalar_select %p24_p1, %s758_s14, %s26_s19  }
   0xb   : > { %p35_p5 = por %p34_p2, %p33_p0  ;;  %p829_p6 = por %p40_p4, %p39_p3 }
   0xc   : > { %p105_p7 = scmp.eq.s32.totalorder %s811_s16, 2  ;;  %p111_p8 = scmp.eq.s32.totalorder %s547_s17, 2 }
   0xd   : > { %p549_p11 = scmp.ge.s32.totalorder %s762_s15, 3 }
   0xe   : > { %p834_p9 = por %p105_p7, %p33_p0  ;;  %p838_p10 = por %p111_p8, %p39_p3 }
   0xf   : > { %133 = sbr.rel (%p549_p11) target bundleno = 56 (0x38), region = 24 }
  0x14   : > { %136 = sbr.rel (!%p35_p5) target bundleno = 56 (0x38), region = 28  ;;  %s137_s25 = sand.u32 (%p35_p5), 1, %s758_s14  }
  0x15   : > { %s551_s26 = sshll.u32 (%p35_p5), %s762_s15, 1  ;;  %s550_s27 = sshll.u32 (%p35_p5), %s137_s25, 7 }
  0x16   : > { %s143_s28 = ssub.s32 (%p35_p5), 5, %s551_s26  ;;  %s848_s5 = scalar_lea.sflag (%p35_p5), [#allocation3], %s137_s25 }
  0x17   : > { %p144_p12 = scmp.lt.s32.totalorder (%p35_p5), %s143_s28, 2  ;;  %s141_s6 = scalar_lea.vmem (%p35_p5), [#allocation2], %s550_s27 }
  0x19   : > { %s1110_s28 = smov (!%p144_p12, %s143_s28), 2 }
  0x1a   : > { %s581_s29 = sshll.u32 %s1110_s28, 6 }
  0x1b   : > { %s149_s30 = ssub.s32 128, %s581_s29 }
  0x1c   : > { %s150_s4 = sshll.u32 %s149_s30, 4 }
  0x1d   : > { %151 = vsyncadd %s848_s5, %s150_s4  ;;  %p851_p13 = scmp.ne.s32.totalorder %s581_s29, 0  ;;  %s583_s8 = sshll.u32 %s762_s15, 7 }
  0x1e   : > { %s155_s11 = scalar_lea.hbm %s1096_s0, %s583_s8  ;;  %s859_s17 = sshll.u32 %s141_s6, 4  ;;  %s161_s17 = int_to_ptr.vmem [resolvable:$true] %s859_s17 }
  0x1f   : > { %s158_s19 = sshll.u32 %s155_s11, 4  ;;  %s585_s20 = sshll.u32 %s1110_s28, 10  ;;  %s862_s19 = int_to_ptr.hbm [resolvable:$true] %s158_s19 }
  0x20   : > { %s646_s25 = sshra.s32 %s862_s19, 4  ;;  %s648_s26 = sshrl.u32 %s585_s20, 4  ;;  %s647_s25 = int_to_ptr.hbm [resolvable:$true] %s646_s25 }
  0x21   : > { %s653_s27 = scalar_lea.hbm %s647_s25, %s648_s26  ;;  %s657_s4 = scalar_lea.hbm %s1096_s0, 320 }
  0x22   : > { %p654_p0 = scmp.ne.s32.totalorder %s647_s25, %s653_s27  ;;  %p658_p3 = scmp.lt.s32.totalorder %s647_s25, %s1096_s0 }
  0x23   : > { %p659_p4 = scmp.lt.s32.totalorder %s657_s4, %s653_s27 }
  0x24   : > { %p655_p1 = pnand %p654_p0, %p851_p13 }
  0x25   : > { %p660_p5 = por %p659_p4, %p658_p3 }
  0x26   : > { %p656_p2 = pneg %p655_p1 }
  0x28   : > { %p661_p7 = pnand %p660_p5, %p656_p2 }
  0x2a   : > { %664 = shalt.err (!%p661_p7)
}
  0x2b   : > { %s665_s9 = sshra.s32 %s161_s17, 4  ;;  %s764_s11 = smov [#allocation2]   ;;  %s666_s9 = int_to_ptr.vmem [resolvable:$true] %s665_s9 }
  0x2c   : > { %s672_s10 = scalar_lea.vmem %s666_s9, %s648_s26  ;;  %s676_s29 = scalar_lea.vmem %s764_s11, 256 }
  0x2d   : > { %p673_p8 = scmp.ne.s32.totalorder %s666_s9, %s672_s10  ;;  %p678_p0 = scmp.lt.s32.totalorder %s676_s29, %s672_s10 }
  0x2f   : > { %p674_p11 = pnand %p673_p8, %p851_p13 }
  0x31   : > { %p675_p12 = pneg %p674_p11 }
  0x33   : > { %p680_p1 = pnand %p678_p0, %p675_p12 }
  0x35   : > { %683 = shalt.err (!%p680_p1)
}
  0x36   : > { %s765_s25 = smov 256   ;;  %s766_s27 = smov 16  }
  0x37   : > { %166 = dma.hbm_to_vmem [thread:$0]  (%p851_p13), %s862_s19, %s585_s20, %s161_s17, %s848_s5, %s765_s25, %s765_s25, %s766_s27  }
  0x38 PF: > { %p561_p2 = scmp.ge.s32.totalorder %s762_s15, 1  ;;  %p168_p3 = scmp.lt.s32.totalorder %s762_s15, 4 }
  0x3a   : > { %p169_p4 = pnand %p561_p2, %p168_p3 }
  0x3b   : > { %s891_s26 = sand.u32 (!%p169_p4), 1, %s754_s13  }
  0x3c   : > { %172 = sbr.rel (%p169_p4) target bundleno = 655 (0x28f), region = 32  ;;  %s562_s30 = sshll.u32 (!%p169_p4), %s891_s26, 7 }
  0x3d   : > { %s175_s7 = scalar_lea.sflag (!%p169_p4), [#allocation3], %s891_s26  ;;  %s897_s28 = scalar_lea.vmem (!%p169_p4), [#allocation2], %s562_s30 }
  0x41   : > { %741 = dma.done.wait (%p829_p6), %s175_s7, 2048  }
  0x42   : > { %743 = vsyncadd (%p829_p6), %s175_s7, 4294965248  ;;  %vm232_vm0 = vcmask 556032   ;;  %v904_v0 = vld [vmem:[%s897_s28 + $0x40] sm:$0xff]  ;;  %v907_v1 = vld [vmem:[%s897_s28 + $0x48] sm:$0xff]  ;;  %v285_v39 = vlaneseq  ;;  %vm290_vm1 = vcmask 130112   ;;  %vm294_vm2 = vcmask 195712  }
  0x43   : > { %v910_v2 = vld [vmem:[%s897_s28] sm:$0xff]  ;;  %v249_v3 = vsel %vm232_vm0, %v907_v1, 0.0  ;;  %v915_v4 = vld [vmem:[%s897_s28 + $0x8] sm:$0xff]  ;;  %v929_v10 = vld [vmem:[%s897_s28 + $0x58] sm:$0xff]  ;;  %vm298_vm3 = vcmask 261312   ;;  %vm307_vm4 = vcmask 1041409  }
  0x44   : > { %v918_v5 = vld [vmem:[%s897_s28 + $0x20] sm:$0xff]  ;;  %v921_v6 = vld [vmem:[%s897_s28 + $0x28] sm:$0xff]  ;;  %v250_v7 = vadd.f32 %v249_v3, %v904_v0  ;;  %v233_v8 = vsel %vm232_vm0, %v915_v4, 0.0  ;;  %v934_v13 = vld [vmem:[%s897_s28 + $0x18] sm:$0xff]  ;;  %v253_v16 = vsel %vm232_vm0, %v929_v10, 0.0  ;;  %v286_v40 = vand.u32 127, %v285_v39 }
  0x45   : > { %v241_v9 = vsel %vm232_vm0, %v921_v6, 0.0  ;;  %v234_v11 = vadd.f32 %v233_v8, %v910_v2  ;;  %v937_v14 = vld [vmem:[%s897_s28 + $0x68] sm:$0xff]  ;;  %v940_v15 = vld [vmem:[%s897_s28 + $0x50] sm:$0xff]  ;;  %v237_v18 = vsel %vm232_vm0, %v934_v13, 0.0  ;;  %v950_v19 = vld [vmem:[%s897_s28 + $0x60] sm:$0xff]  ;;  %vm309_vm5 = vcmask 261120  }
  0x46   : > { %v242_v12 = vadd.f32 %v241_v9, %v918_v5  ;;  %251 = vadd.xlane.f32.xlu1 %v250_v7  ;;  %v945_v17 = vld [vmem:[%s897_s28 + $0x10] sm:$0xff]  ;;  %v257_v20 = vsel %vm232_vm0, %v937_v14, 0.0  ;;  %v254_v21 = vadd.f32 %v253_v16, %v940_v15  ;;  %v958_v24 = vld [vmem:[%s897_s28 + $0x78] sm:$0xff]  ;;  %v274_v34 = vld [vmem:[%s1097_s1 + $0x8] sm:$0xff]  ;;  %v288_v42 = vadd.s32 4294967288, %v286_v40  ;;  %s994_s11 = scalar_lea.vmem [#allocation5], %s562_s30 }
  0x47   : > { %235 = vadd.xlane.f32.xlu0 %v234_v11  ;;  %v238_v22 = vadd.f32 %v237_v18, %v945_v17  ;;  %v258_v23 = vadd.f32 %v257_v20, %v950_v19  ;;  %v961_v25 = vld [vmem:[%s897_s28 + $0x38] sm:$0xff]  ;;  %v964_v26 = vld [vmem:[%s897_s28 + $0x70] sm:$0xff]  ;;  %v261_v27 = vsel %vm232_vm0, %v958_v24, 0.0  ;;  %v273_v35 = vld [vmem:[%s1097_s1] sm:$0xff]  ;;  %v292_v51 = vadd.s32 4294967280, %v286_v40  ;;  %s448_s29 = scalar_lea.sflag [#allocation4], %s891_s26 }
  0x48   : > { %243 = vadd.xlane.f32.xlu2 %v242_v12  ;;  %v969_v28 = vld [vmem:[%s897_s28 + $0x30] sm:$0xff]  ;;  %v245_v29 = vsel %vm232_vm0, %v961_v25, 0.0  ;;  %v262_v30 = vadd.f32 %v261_v27, %v964_v26  ;;  %v276_v32 = vld [vmem:[%s1097_s1 + $0x18] sm:$0xff]  ;;  %v296_v55 = vadd.s32 4294967272, %v286_v40  ;;  %v335_v20 = vld [vmem:[%s1098_s2] sm:$0x3] }
  0x49   : > { %v246_v31 = vadd.f32 %v245_v29, %v969_v28  ;;  %324 = vmatpush.msra.mxu0 %v276_v32  ;;  %v275_v33 = vld [vmem:[%s1097_s1 + $0x10] sm:$0xff]  ;;  %vm340_vm6 = vcmask 1041408   ;;  %vm336_vm8 = vcmask 15360   ;;  %v367_v27 = vshrl.u32 %v285_v39, 7  ;;  %s568_s25 = sshll.u32 (%p834_p9), %s811_s16, 1 }
  0x4a   : > { %565 = vmatpush.msk.msra.mxu1 %vm340_vm6, %v335_v20  ;;  %s456_s27 = ssub.s32 (%p834_p9), 5, %s568_s25 }
  0x4b   : > { %325 = vmatpush.msra.mxu0 %v275_v33  ;;  %635 = vset.pattern.permute.xlu2 %v367_v27  ;;  %v380_v29 = vadd.s32 16, %v367_v27  ;;  %p457_p6 = scmp.lt.s32.totalorder (%p834_p9), %s456_s27, 2 }
  0x4d   : > { %326 = vmatpush.msra.mxu0 %v274_v34  ;;  %637 = vset.pattern.permute.xlu1 %v380_v29  ;;  %v386_v34 = vadd.s32 24, %v367_v27 }
  0x4e   : > { %255 = vadd.xlane.f32.xlu1 %v254_v21 }
  0x4f   : > { %239 = vadd.xlane.f32.xlu0 %v238_v22  ;;  %327 = vmatpush.msra.mxu0 %v273_v35 }
  0x50   : > { %259 = vadd.xlane.f32.xlu2 %v258_v23 }
  0x56   : > { %263 = vadd.xlane.f32.xlu1 %v262_v30  ;;  %v374_v30 = vadd.s32 8, %v367_v27 }
  0x57   : > { %247 = vadd.xlane.f32.xlu0 %v246_v31 }
  0x58   : > { %636 = vset.pattern.permute.xlu0 %v374_v30 }
  0xb9   : > { %v252_v36 = vpop.xlane.xlu1 %251 }
  0xba   : > { %v236_v37 = vpop.xlane.xlu0 %235  ;;  %v269_v47 = vmul.f32 0.0051020407, %v252_v36 }
  0xbb   : > { %v244_v38 = vpop.xlane.xlu2 %243  ;;  %v265_v48 = vmul.f32 0.0051020407, %v236_v37 }
  0xbc   : > { %v300_v53 = vperm.slane %v269_v47, %v286_v40  ;;  %v267_v54 = vmul.f32 0.0051020407, %v244_v38 }
  0xbd   : > { %v287_v56 = vperm.slane %v265_v48, %v286_v40 }
  0xbe   : > { %v293_v3 = vperm.slane %v267_v54, %v292_v51 }
  0xc1   : > { %v256_v41 = vpop.xlane.xlu1 %255 }
  0xc2   : > { %v270_v43 = vmul.f32 0.0051020407, %v256_v41  ;;  %v240_v44 = vpop.xlane.xlu0 %239 }
  0xc3   : > { %v260_v45 = vpop.xlane.xlu2 %259  ;;  %v266_v46 = vmul.f32 0.0051020407, %v240_v44 }
  0xc4   : > { %v271_v49 = vmul.f32 0.0051020407, %v260_v45  ;;  %v301_v50 = vperm.slane %v270_v43, %v288_v42 }
  0xc5   : > { %v289_v52 = vperm.slane %v266_v46, %v288_v42 }
  0xc6   : > { %v303_v57 = vperm.slane %v271_v49, %v292_v51  ;;  %v302_v59 = vsel %vm290_vm1, %v301_v50, %v300_v53 }
  0xc7   : > { %v291_v62 = vsel %vm290_vm1, %v289_v52, %v287_v56 }
  0xc8   : > { %v304_v9 = vsel %vm294_vm2, %v303_v57, %v302_v59  ;;  %v295_v11 = vsel %vm294_vm2, %v293_v3, %v291_v62 }
  0xc9   : > { %v264_v58 = vpop.xlane.xlu1 %263 }
  0xca   : > { %v272_v60 = vmul.f32 0.0051020407, %v264_v58  ;;  %v248_v61 = vpop.xlane.xlu0 %247 }
  0xcb   : > { %v268_v63 = vmul.f32 0.0051020407, %v248_v61 }
  0xcc   : > { %v305_v7 = vperm.slane %v272_v60, %v296_v55 }
  0xcd   : > { %v297_v8 = vperm.slane %v268_v63, %v296_v55 }
  0xce   : > { %v306_v12 = vsel %vm298_vm3, %v305_v7, %v304_v9 }
  0xcf   : > { %v299_v16 = vsel %vm298_vm3, %v297_v8, %v295_v11 }
  0xd0   : > { %v308_v18 = vsel %vm307_vm4, %v306_v12, %v299_v16 }
  0xd1   : > { %564 = vmatmul.msk.f32.vlgmr.msra.gmra.mxu0 %vm309_vm5, %v308_v18 }
 0x14e   : > { %v329_v21 = vpop.f32.mrf.mxu0 }
 0x14f   : > { %vm332_vm7 = vcmp.ge.f32.partialorder %v329_v21, 0.0  ;;  %v333_v22 = vmul.f32 0.2, %v329_v21 }
 0x151   : > { %v334_v23 = vsel %vm332_vm7, %v329_v21, %v333_v22 }
 0x152   : > { %566 = vmatmul.msk.f32.vlgmr.msra.gmra.mxu1 %vm336_vm8, %v334_v23 }
 0x1cf   : > { %v361_v31 = vpop.f32.mrf.mxu1 }
 0x1d0   : > { %644 = vtanh.f32 %v361_v31 }
 0x1d6   : > { %v645_v32 = vpop.eup %644 }
 0x1d7   : > { %v365_v33 = vperm.slane %v645_v32, 0  ;;  %v390_v35 = vperm.slane %v645_v32, 1 }
 0x1d9   : > { %382 = vperm.xlu1 %637, %v365_v33   ;;  %376 = vperm.xlu0 %636, %v365_v33  }
 0x1da   : > { %370 = vperm.xlu2 %635, %v365_v33  }
 0x1e1   : > { %640 = vset.pattern.permute.xlu1 %v374_v30  ;;  %643 = vset.pattern.permute.xlu0 %v386_v34 }
 0x1e2   : > { %638 = vset.pattern.permute.xlu2 %v386_v34 }
 0x1e9   : > { %401 = vperm.xlu1 %640, %v390_v35  }
 0x1ea   : > { %388 = vperm.xlu2 %638, %v365_v33  }
 0x1f1   : > { %642 = vset.pattern.permute.xlu1 %v386_v34 }
 0x1f2   : > { %639 = vset.pattern.permute.xlu2 %v367_v27 }
 0x1f9   : > { %413 = vperm.xlu1 %642, %v390_v35  }
 0x1fa   : > { %395 = vperm.xlu2 %639, %v390_v35  }
 0x202   : > { %641 = vset.pattern.permute.xlu2 %v380_v29 }
 0x20a   : > { %407 = vperm.xlu2 %641, %v390_v35  }
 0x234   : > { %v371_v36 = vpop.permute.xlu2 %370 }
 0x235   : > { %v415_v37 = vadd.f32 %v371_v36, %v910_v2  ;;  %v416_v38 = vadd.f32 %v371_v36, %v915_v4 }
 0x237   : > { %431 = vst [vmem:[%s994_s11] sm:$0xff] %v415_v37 }
 0x238   : > { %432 = vst.msk [vmem:[%s994_s11 + $0x8] sm:$0xff] %vm232_vm0, %v416_v38 }
 0x244   : > { %v389_v39 = vpop.permute.xlu2 %388 }
 0x245   : > { %v421_v40 = vadd.f32 %v389_v39, %v969_v28  ;;  %v422_v2 = vadd.f32 %v389_v39, %v961_v25 }
 0x247   : > { %437 = vst [vmem:[%s994_s11 + $0x30] sm:$0xff] %v421_v40 }
 0x248   : > { %438 = vst.msk [vmem:[%s994_s11 + $0x38] sm:$0xff] %vm232_vm0, %v422_v2 }
 0x24b   : > { %v383_v4 = vpop.permute.xlu1 %382  ;;  %v377_v41 = vpop.permute.xlu0 %376 }
 0x24c   : > { %v419_v42 = vadd.f32 %v383_v4, %v918_v5  ;;  %v420_v43 = vadd.f32 %v383_v4, %v921_v6  ;;  %v417_v44 = vadd.f32 %v377_v41, %v945_v17  ;;  %v418_v45 = vadd.f32 %v377_v41, %v934_v13 }
 0x24e   : > { %435 = vst [vmem:[%s994_s11 + $0x20] sm:$0xff] %v419_v42 }
 0x24f   : > { %436 = vst.msk [vmem:[%s994_s11 + $0x28] sm:$0xff] %vm232_vm0, %v420_v43 }
 0x250   : > { %433 = vst [vmem:[%s994_s11 + $0x10] sm:$0xff] %v417_v44 }
 0x251   : > { %434 = vst.msk [vmem:[%s994_s11 + $0x18] sm:$0xff] %vm232_vm0, %v418_v45 }
 0x254   : > { %v396_v25 = vpop.permute.xlu2 %395 }
 0x255   : > { %v423_v28 = vadd.f32 %v396_v25, %v904_v0  ;;  %v424_v5 = vadd.f32 %v396_v25, %v907_v1 }
 0x257   : > { %439 = vst [vmem:[%s994_s11 + $0x40] sm:$0xff] %v423_v28 }
 0x258   : > { %440 = vst.msk [vmem:[%s994_s11 + $0x48] sm:$0xff] %vm232_vm0, %v424_v5 }
 0x25b   : > { %v402_v6 = vpop.permute.xlu1 %401 }
 0x25c   : > { %v425_v13 = vadd.f32 %v402_v6, %v940_v15  ;;  %v426_v17 = vadd.f32 %v402_v6, %v929_v10 }
 0x25e   : > { %441 = vst [vmem:[%s994_s11 + $0x50] sm:$0xff] %v425_v13 }
 0x25f   : > { %442 = vst.msk [vmem:[%s994_s11 + $0x58] sm:$0xff] %vm232_vm0, %v426_v17 }
 0x264   : > { %v408_v46 = vpop.permute.xlu2 %407 }
 0x265   : > { %v427_v47 = vadd.f32 %v408_v46, %v950_v19  ;;  %v428_v0 = vadd.f32 %v408_v46, %v937_v14 }
 0x267   : > { %443 = vst [vmem:[%s994_s11 + $0x60] sm:$0xff] %v427_v47 }
 0x268   : > { %444 = vst.msk [vmem:[%s994_s11 + $0x68] sm:$0xff] %vm232_vm0, %v428_v0 }
 0x26b   : > { %v414_v1 = vpop.permute.xlu1 %413  ;;  %454 = sbr.rel (!%p834_p9) target bundleno = 655 (0x28f), region = 40 }
 0x26c   : > { %v429_v48 = vadd.f32 %v414_v1, %v964_v26  ;;  %v430_v49 = vadd.f32 %v414_v1, %v958_v24 }
 0x26e   : > { %445 = vst [vmem:[%s994_s11 + $0x70] sm:$0xff] %v429_v48 }
 0x26f   : > { %446 = vst.msk [vmem:[%s994_s11 + $0x78] sm:$0xff] %vm232_vm0, %v430_v49 }
 0x270   : > { %s1112_s27 = smov (!%p457_p6, %s456_s27), 2 }
 0x271   : > { %s587_s30 = sshll.u32 %s1112_s27, 6 }
 0x272   : > { %s462_s7 = ssub.s32 128, %s587_s30 }
 0x273   : > { %s463_s28 = sshll.u32 %s462_s7, 4 }
 0x274   : > { %464 = vsyncadd %s448_s29, %s463_s28  ;;  %p1043_p13 = scmp.ne.s32.totalorder %s587_s30, 0  ;;  %s589_s22 = sshll.u32 %s811_s16, 7 }
 0x275   : > { %s468_s19 = scalar_lea.hbm %s1099_s3, %s589_s22  ;;  %s471_s20 = sshll.u32 %s994_s11, 4  ;;  %s1052_s20 = int_to_ptr.vmem [resolvable:$true] %s471_s20 }
 0x276   : > { %s473_s4 = sshll.u32 %s468_s19, 4  ;;  %s591_s6 = sshll.u32 %s1112_s27, 10  ;;  %s1054_s4 = int_to_ptr.hbm [resolvable:$true] %s473_s4 }
 0x277   : > { %s685_s8 = sshra.s32 %s1052_s20, 4  ;;  %s687_s9 = sshrl.u32 %s591_s6, 4  ;;  %s686_s8 = int_to_ptr.vmem [resolvable:$true] %s685_s8 }
 0x278   : > { %s692_s10 = scalar_lea.vmem %s686_s8, %s687_s9  ;;  %s767_s16 = smov [#allocation5]  }
 0x279   : > { %p693_p9 = scmp.ne.s32.totalorder %s686_s8, %s692_s10  ;;  %s696_s25 = scalar_lea.vmem %s767_s16, 256 }
 0x27a   : > { %p698_p8 = scmp.lt.s32.totalorder %s696_s25, %s692_s10 }
 0x27b   : > { %p694_p5 = pnand %p693_p9, %p1043_p13 }
 0x27d   : > { %p695_p7 = pneg %p694_p5 }
 0x27f   : > { %p700_p11 = pnand %p698_p8, %p695_p7 }
 0x281   : > { %703 = shalt.err (!%p700_p11)
}
 0x282   : > { %s704_s11 = sshra.s32 %s1054_s4, 4  ;;  %s715_s22 = scalar_lea.hbm %s1099_s3, 320  ;;  %s705_s11 = int_to_ptr.hbm [resolvable:$true] %s704_s11 }
 0x283   : > { %s711_s30 = scalar_lea.hbm %s705_s11, %s687_s9  ;;  %p716_p2 = scmp.lt.s32.totalorder %s705_s11, %s1099_s3 }
 0x284   : > { %p712_p12 = scmp.ne.s32.totalorder %s705_s11, %s711_s30  ;;  %p717_p3 = scmp.lt.s32.totalorder %s715_s22, %s711_s30 }
 0x286   : > { %p713_p0 = pnand %p712_p12, %p1043_p13  ;;  %p718_p4 = por %p717_p3, %p716_p2 }
 0x288   : > { %p714_p1 = pneg %p713_p0 }
 0x28a   : > { %p719_p6 = pnand %p718_p4, %p714_p1 }
 0x28c   : > { %722 = shalt.err (!%p719_p6)
}
 0x28d   : > { %s768_s19 = smov 256   ;;  %s769_s8 = smov 16  }
 0x28e   : > { %479 = dma.vmem_to_hbm [thread:$0]  (%p1043_p13), %s1052_s20, %s591_s6, %s1054_s4, %s448_s29, %s768_s19, %s768_s19, %s769_s8  }
 0x28f PF: > { %p598_p9 = scmp.ge.s32.totalorder %s762_s15, 2  ;;  %s488_s9 = sand.u32 1, %s750_s12  }
 0x290   : > { %s489_s10 = scalar_lea.sflag [#allocation4], %s488_s9 }
 0x291   : > { %p595_p5 = pnand %p598_p9, %p838_p10 }
 0x293   : > { %p596_p7 = pneg %p595_p5 }
 0x295   : > { %745 = dma.done.wait (%p596_p7), %s489_s10, 2048  }
 0x296   : > { %747 = vsyncadd (%p596_p7), %s489_s10, 4294965248  ;;  %p16_p8 = scmp.ge.s32.totalorder %s815_s18, 5   ;;  %s1105_s12 = smov %s754_s13 }
 0x297   : > { %s1106_s13 = smov %s758_s14  ;;  %s1107_s14 = smov %s827_s21 }
 0x298   : > { %s1108_s15 = smov %s815_s18  ;;  %18 = sbr.rel (!%p16_p8) target bundleno = 5 (0x5), region = 77 }
 0x29d   :  { %495 = vsyncpa [#allocation3], 1 }
 0x29e   :  { %497 = vsyncpa [#allocation3 + $0x1], 1 }
 0x29f   :  { %498 = vsyncpa [#allocation4], 1 }
 0x2a0   :  { %500 = vsyncpa [#allocation4 + $0x1], 1 }

</bundles_post_ra>
